<compile_context>
chip_gen: v7x
topology: tpu7x:2x2x1
jax: 0.10.0
libtpu: 0.0.40
codegen_flags: <defaults>
</compile_context>

<pallas_src>
import math

import jax
import jax.numpy as jnp
from jax.experimental import pallas as pl
from jax.experimental.pallas import tpu as pltpu

K = 3  # kernel_size
S = 3  # stride


def _maxpool_kernel(x_ref, o_ref):
    # x_ref: (ho*S, wo*S, lanes)   o_ref: (ho, wo, lanes)
    ho, wo, lanes = o_ref.shape
    x = x_ref[...]
    # H-window reduce: splitting the leading axis keeps the (sublane, lane)
    # tiles untouched (purely logical reshape); the max is elementwise VPU work.
    xh = x.reshape(ho, S, wo * S, lanes).max(axis=1)          # (ho, wo*S, lanes)
    # W-window reduce: regroup the sublane axis into (wo, S) and reduce the
    # size-S window axis. Channel/lane axis untouched -> lane-dense store.
    # (Compute stays in the input dtype; exact for max/compare.)
    o_ref[...] = xh.reshape(ho, wo, S, lanes).max(axis=2)     # (ho, wo, lanes)


def _pool_out_size(size):
    # PyTorch ceil_mode rule: last window must start strictly inside the input.
    out = math.ceil((size - K) / S) + 1
    if (out - 1) * S >= size:
        out -= 1
    return out


@jax.jit
def maxpool2d_ceil(x):
    """MaxPool2d(k=3, s=3, p=0, ceil_mode=True) on NCHW input."""
    n, c, h, w = x.shape
    nc = n * c
    h_out = _pool_out_size(h)
    w_out = _pool_out_size(w)
    h_pad = (h_out - 1) * S + K
    w_pad = (w_out - 1) * S + K

    if jnp.issubdtype(x.dtype, jnp.floating):
        fill = jnp.asarray(-jnp.inf, dtype=x.dtype)
    else:  # integer inputs: pad with dtype minimum, not -inf
        fill = jnp.asarray(jnp.iinfo(x.dtype).min, dtype=x.dtype)

    # Layout change: channels -> lanes. The tail pad sits next to the transpose
    # so XLA fuses them into one pass over the tensor.
    xt = jnp.transpose(x.reshape(nc, h, w), (1, 2, 0))        # (H, W, NC)
    if h_pad != h or w_pad != w:
        xt = jnp.pad(
            xt, ((0, h_pad - h), (0, w_pad - w), (0, 0)), constant_values=fill
        )

    itemsize = jnp.dtype(x.dtype).itemsize
    tile_budget = 8 * 1024 * 1024  # per input tile; 2x-buffered fits v7x 64 MiB

    # Channel (lane) blocking: full NC when small, else multiples of 128 lanes.
    if nc <= 128:
        lane_blk = nc
    else:
        lane_blk = 128
        while (lane_blk * 2 <= min(nc, 1024)
               and S * w_pad * (lane_blk * 2) * itemsize <= tile_budget):
            lane_blk *= 2
    grid_l = pl.cdiv(nc, lane_blk)

    # H blocking in multiples of the stride, sized against the VMEM budget.
    rows = (tile_budget // max(1, w_pad * lane_blk * itemsize)) // S * S
    h_blk = min(h_pad, max(S, rows))
    ho_blk = h_blk // S
    grid_h = pl.cdiv(h_pad, h_blk)

    out = pl.pallas_call(
        _maxpool_kernel,
        out_shape=jax.ShapeDtypeStruct((h_out, w_out, nc), x.dtype),
        grid=(grid_l, grid_h),
        in_specs=[pl.BlockSpec((h_blk, w_pad, lane_blk), lambda l, i: (i, 0, l))],
        out_specs=pl.BlockSpec((ho_blk, w_out, lane_blk), lambda l, i: (i, 0, l)),
        compiler_params=pltpu.CompilerParams(
            dimension_semantics=("parallel", "parallel")
        ),
        cost_estimate=pl.CostEstimate(
            flops=(K * K - 1) * h_out * w_out * nc,
            transcendentals=0,
            bytes_accessed=(h_pad * w_pad + h_out * w_out) * nc * itemsize,
        ),
    )(xt)

    # Back to NCHW.
    return jnp.transpose(out, (2, 0, 1)).reshape(n, c, h_out, w_out)


if __name__ == "__main__":
    key = jax.random.PRNGKey(0)
    x = jax.random.normal(key, (2, 4, 16, 16), dtype=jnp.float32)

    y = jax.block_until_ready(maxpool2d_ceil(x))

    # Reference: lax.reduce_window on the same -inf padded input (matches
    # PyTorch MaxPool2d(k=3, s=3, p=0, ceil_mode=True) for this config).
    n, c, h, w = x.shape
    h_out, w_out = y.shape[2], y.shape[3]
    h_pad = (h_out - 1) * S + K
    w_pad = (w_out - 1) * S + K
    xp = jnp.pad(
        x,
        ((0, 0), (0, 0), (0, h_pad - h), (0, w_pad - w)),
        constant_values=jnp.asarray(-jnp.inf, x.dtype),
    )
    ref = jax.lax.reduce_window(
        xp, -jnp.inf, jax.lax.max,
        window_dimensions=(1, 1, K, K),
        window_strides=(1, 1, S, S),
        padding="VALID",
    )
    assert y.shape == (2, 4, 6, 6), y.shape
    assert jnp.allclose(y, ref), "mismatch vs reference"

    print("KERNEL_OK")
</pallas_src>

<mosaic_0001>
module attributes {stable_mosaic.version = 11 : i64} {
  func.func @_maxpool_kernel(%arg0: i32, %arg1: i32, %arg2: memref<18x18x8xf32, #tpu.memory_space<vmem>>, %arg3: memref<6x6x8xf32, #tpu.memory_space<vmem>>) attributes {dimension_semantics = [#tpu.dimension_semantics<parallel>, #tpu.dimension_semantics<parallel>], iteration_bounds = array<i64: 1, 1>, scalar_prefetch = 0 : i64, scratch_operands = 0 : i64, tpu.core_type = #tpu.core_type<tc>, window_params = [{transform_indices = @transform_0, window_bounds = array<i64: 18, 18, 8>}, {transform_indices = @transform_1, window_bounds = array<i64: 6, 6, 8>}]} {
    %c0 = arith.constant 0 : index
    %c0_0 = arith.constant 0 : index
    %c0_1 = arith.constant 0 : index
    %0 = vector.load %arg2[%c0, %c0_0, %c0_1] : memref<18x18x8xf32, #tpu.memory_space<vmem>>, vector<18x18x8xf32>
    %1 = vector.shape_cast %0 : vector<18x18x8xf32> to vector<6x3x18x8xf32>
    %cst = arith.constant dense<0xFF800000> : vector<6x18x8xf32>
    %2 = vector.multi_reduction <maximumf>, %1, %cst [1] : vector<6x3x18x8xf32> to vector<6x18x8xf32>
    %3 = vector.shape_cast %2 : vector<6x18x8xf32> to vector<6x6x3x8xf32>
    %cst_2 = arith.constant dense<0xFF800000> : vector<6x6x8xf32>
    %4 = vector.multi_reduction <maximumf>, %3, %cst_2 [2] : vector<6x6x3x8xf32> to vector<6x6x8xf32>
    %c0_3 = arith.constant 0 : index
    %c0_4 = arith.constant 0 : index
    %c0_5 = arith.constant 0 : index
    %5 = vector.load %arg3[%c0_3, %c0_4, %c0_5] : memref<6x6x8xf32, #tpu.memory_space<vmem>>, vector<6x6x8xf32>
    tpu.vector_store %arg3[%c0_3, %c0_4, %c0_5], %4 {strides = array<i32>} : memref<6x6x8xf32, #tpu.memory_space<vmem>>, vector<6x6x8xf32>,
    return
  }
  func.func @transform_0(%arg0: i32, %arg1: i32) -> (i32, i32, i32) {
    %c0_i32 = arith.constant 0 : i32
    %c0_i32_0 = arith.constant 0 : i32
    return %arg1, %c0_i32, %arg0 : i32, i32, i32
  }
  func.func @transform_1(%arg0: i32, %arg1: i32) -> (i32, i32, i32) {
    %c0_i32 = arith.constant 0 : i32
    %c0_i32_0 = arith.constant 0 : i32
    return %arg1, %c0_i32, %arg0 : i32, i32, i32
  }
}

</mosaic_0001>

<bundles_post_ra>
// kernel: maxpool2d_ceil.1
= control target key start
LH: loop header
LB: loop body
LE: loop exit
PB: predicated region body
PF: predicated region fallthrough
CT: control target
= control target key end

     0   :  { %vm62_vm0 = vcmask 64512   ;;  %vm73_vm1 = vcmask 58368   ;;  %v2104_v22 = vmov 1966171168   ;;  %v176_v43 = vlaneseq  ;;  %s3407_s0 = inlined_call_operand.vmem [shape: f32[18,18,8], index: 0, kind: input, shape index: {}]   ;;  %s3408_s1 = inlined_call_operand.vmem [shape: f32[6,6,8], index: 1, kind: output, shape index: {}]  }
   0x1   :  { %v8_v0 = vld [vmem:[%s3407_s0] sm:$0xff]  ;;  %v9_v1 = vld [vmem:[%s3407_s0 + $0x8] sm:$0xff]  ;;  %v10_v2 = vld [vmem:[%s3407_s0 + $0x10] sm:$0x3]  ;;  %v2159_v23 = vunpack.c.l.s4 %v2104_v22  ;;  %vm1756_vm2 = vcmask 59392   ;;  %vm2045_vm3 = vcmask 1041409  }
   0x2   :  { %v11_v3 = vld [vmem:[%s3407_s0 + $0x18] sm:$0xff]  ;;  %v12_v4 = vld [vmem:[%s3407_s0 + $0x20] sm:$0xff]  ;;  %v13_v5 = vld [vmem:[%s3407_s0 + $0x28] sm:$0x3]  ;;  %v63_v6 = vsel %vm62_vm0, %v8_v0, -inf  ;;  %v68_v7 = vsel %vm62_vm0, %v9_v1, -inf }
   0x3   :  { %v14_v8 = vld [vmem:[%s3407_s0 + $0x30] sm:$0xff]  ;;  %v15_v9 = vld [vmem:[%s3407_s0 + $0x38] sm:$0xff]  ;;  %v64_v10 = vsel %vm62_vm0, %v11_v3, -inf  ;;  %v69_v11 = vsel %vm62_vm0, %v12_v4, -inf  ;;  %v16_v12 = vld [vmem:[%s3407_s0 + $0x40] sm:$0x3]  ;;  %v175_v42 = vunpack.c.0.s8 %v2159_v23 }
   0x4   :  { %v17_v13 = vld [vmem:[%s3407_s0 + $0x48] sm:$0xff]  ;;  %v65_v14 = vmax.f32 %v63_v6, %v64_v10  ;;  %v66_v15 = vsel %vm62_vm0, %v14_v8, -inf  ;;  %v70_v16 = vmax.f32 %v68_v7, %v69_v11  ;;  %v18_v17 = vld [vmem:[%s3407_s0 + $0x50] sm:$0xff]  ;;  %v20_v18 = vld [vmem:[%s3407_s0 + $0x60] sm:$0xff]  ;;  %v71_v19 = vsel %vm62_vm0, %v15_v9, -inf }
   0x5   :  { %v74_v20 = vsel %vm73_vm1, %v10_v2, -inf  ;;  %v75_v21 = vsel %vm73_vm1, %v13_v5, -inf  ;;  %v19_v24 = vld [vmem:[%s3407_s0 + $0x58] sm:$0x3]  ;;  %v21_v25 = vld [vmem:[%s3407_s0 + $0x68] sm:$0xff]  ;;  %v77_v30 = vsel %vm73_vm1, %v16_v12, -inf }
   0x6   :  { %v23_v26 = vld [vmem:[%s3407_s0 + $0x78] sm:$0xff]  ;;  %v76_v27 = vmax.f32 %v74_v20, %v75_v21  ;;  %v22_v28 = vld [vmem:[%s3407_s0 + $0x70] sm:$0x3]  ;;  %v2173_v29 = vmax.f32 %v65_v14, %v66_v15  ;;  %v79_v31 = vsel %vm62_vm0, %v17_v13, -inf  ;;  %v80_v32 = vsel %vm62_vm0, %v20_v18, -inf  ;;  %v24_v33 = vld [vmem:[%s3407_s0 + $0x80] sm:$0xff] }
   0x7   :  { %v26_v34 = vld [vmem:[%s3407_s0 + $0x90] sm:$0xff]  ;;  %v2184_v35 = vmax.f32 %v70_v16, %v71_v19  ;;  %v81_v36 = vmax.f32 %v79_v31, %v80_v32  ;;  %v82_v37 = vsel %vm62_vm0, %v23_v26, -inf  ;;  %v84_v38 = vsel %vm62_vm0, %v18_v17, -inf  ;;  %v29_v39 = vld [vmem:[%s3407_s0 + $0xa8] sm:$0xff]  ;;  %v32_v40 = vld [vmem:[%s3407_s0 + $0xc0] sm:$0xff] }
   0x8   :  { %v85_v41 = vsel %vm62_vm0, %v21_v25, -inf  ;;  %v25_v44 = vld [vmem:[%s3407_s0 + $0x88] sm:$0x3]  ;;  %v27_v45 = vld [vmem:[%s3407_s0 + $0x98] sm:$0xff]  ;;  %v30_v46 = vld [vmem:[%s3407_s0 + $0xb0] sm:$0xff]  ;;  %v2205_v47 = vmax.f32 %v76_v27, %v77_v30  ;;  %v89_v49 = vsel %vm73_vm1, %v19_v24, -inf  ;;  %v172_v56 = vcombine.high %v2173_v29, %v2173_v29 }
   0x9   :  { %v86_v48 = vmax.f32 %v84_v38, %v85_v41  ;;  %v90_v50 = vsel %vm73_vm1, %v22_v28, -inf  ;;  %v28_v51 = vld [vmem:[%s3407_s0 + $0xa0] sm:$0x3]  ;;  %v33_v52 = vld [vmem:[%s3407_s0 + $0xc8] sm:$0xff]  ;;  %v2215_v53 = vmax.f32 %v81_v36, %v82_v37  ;;  %v87_v54 = vsel %vm62_vm0, %v24_v33, -inf  ;;  %v35_v63 = vld [vmem:[%s3407_s0 + $0xd8] sm:$0xff] }
   0xa   :  { %v94_v55 = vsel %vm62_vm0, %v26_v34, -inf  ;;  %v31_v57 = vld [vmem:[%s3407_s0 + $0xb8] sm:$0x3]  ;;  %v34_v58 = vld [vmem:[%s3407_s0 + $0xd0] sm:$0x3]  ;;  %v91_v59 = vmax.f32 %v89_v49, %v90_v50  ;;  %v95_v60 = vsel %vm62_vm0, %v29_v39, -inf  ;;  %v221_v62 = vcombine.high %v2184_v35, %v2184_v35 }
   0xb   :  { %v97_v61 = vsel %vm62_vm0, %v32_v40, -inf  ;;  %v38_v0 = vld [vmem:[%s3407_s0 + $0xf0] sm:$0xff]  ;;  %v92_v1 = vsel %vm73_vm1, %v25_v44, -inf  ;;  %v96_v2 = vmax.f32 %v94_v55, %v95_v60  ;;  %v99_v3 = vsel %vm62_vm0, %v27_v45, -inf  ;;  %v36_v5 = vld [vmem:[%s3407_s0 + $0xe0] sm:$0xff]  ;;  %v41_v6 = vld [vmem:[%s3407_s0 + $0x108] sm:$0xff] }
   0xc   :  { %v100_v4 = vsel %vm62_vm0, %v30_v46, -inf  ;;  %v2246_v7 = vmax.f32 %v86_v48, %v87_v54  ;;  %v102_v9 = vsel %vm62_vm0, %v33_v52, -inf  ;;  %v104_v10 = vsel %vm73_vm1, %v28_v51, -inf  ;;  %v37_v11 = vld [vmem:[%s3407_s0 + $0xe8] sm:$0x3]  ;;  %v39_v12 = vld [vmem:[%s3407_s0 + $0xf8] sm:$0xff] }
   0xd   :  { %v101_v8 = vmax.f32 %v99_v3, %v100_v4  ;;  %v2256_v13 = vmax.f32 %v96_v2, %v97_v61  ;;  %v105_v14 = vsel %vm73_vm1, %v31_v57, -inf  ;;  %v107_v15 = vsel %vm73_vm1, %v34_v58, -inf  ;;  %v40_v17 = vld [vmem:[%s3407_s0 + $0x100] sm:$0x3]  ;;  %v42_v18 = vld [vmem:[%s3407_s0 + $0x110] sm:$0xff]  ;;  %v47_v26 = vld [vmem:[%s3407_s0 + $0x138] sm:$0xff] }
   0xe   :  { %v292_v16 = vcombine.high %v2215_v53, %v2215_v53  ;;  %v106_v20 = vmax.f32 %v104_v10, %v105_v14  ;;  %v109_v21 = vsel %vm62_vm0, %v35_v63, -inf  ;;  %v110_v22 = vsel %vm62_vm0, %v38_v0, -inf  ;;  %v43_v24 = vld [vmem:[%s3407_s0 + $0x118] sm:$0x3]  ;;  %v44_v25 = vld [vmem:[%s3407_s0 + $0x120] sm:$0xff]  ;;  %v45_v32 = vld [vmem:[%s3407_s0 + $0x128] sm:$0xff] }
   0xf   :  { %v2268_v19 = vmax.f32 %v101_v8, %v102_v9  ;;  %v2281_v27 = vmax.f32 %v91_v59, %v92_v1  ;;  %v111_v28 = vmax.f32 %v109_v21, %v110_v22  ;;  %v112_v30 = vsel %vm62_vm0, %v41_v6, -inf  ;;  %v46_v33 = vld [vmem:[%s3407_s0 + $0x130] sm:$0x3]  ;;  %v48_v40 = vld [vmem:[%s3407_s0 + $0x140] sm:$0xff]  ;;  %v49_v41 = vld [vmem:[%s3407_s0 + $0x148] sm:$0x3] }
  0x10   :  { %v114_v31 = vsel %vm62_vm0, %v36_v5, -inf  ;;  %v50_v34 = vld [vmem:[%s3407_s0 + $0x150] sm:$0xff]  ;;  %v2294_v36 = vmax.f32 %v106_v20, %v107_v15  ;;  %v115_v37 = vsel %vm62_vm0, %v39_v12, -inf  ;;  %v341_v38 = vcombine.high %v2246_v7, %v2246_v7  ;;  %v51_v49 = vld [vmem:[%s3407_s0 + $0x158] sm:$0xff]  ;;  %v52_v50 = vld [vmem:[%s3407_s0 + $0x160] sm:$0x3] }
  0x11   :  { %v412_v39 = vcombine.high %v2256_v13, %v2256_v13  ;;  %v116_v44 = vmax.f32 %v114_v31, %v115_v37  ;;  %v117_v45 = vsel %vm62_vm0, %v42_v18, -inf  ;;  %v119_v46 = vsel %vm73_vm1, %v37_v11, -inf  ;;  %v53_v51 = vld [vmem:[%s3407_s0 + $0x168] sm:$0xff]  ;;  %v54_v58 = vld [vmem:[%s3407_s0 + $0x170] sm:$0xff]  ;;  %v56_v59 = vld [vmem:[%s3407_s0 + $0x180] sm:$0xff] }
  0x12   :  { %v120_v48 = vsel %vm73_vm1, %v40_v17, -inf  ;;  %v2319_v52 = vmax.f32 %v111_v28, %v112_v30  ;;  %v124_v54 = vsel %vm62_vm0, %v44_v25, -inf  ;;  %v125_v55 = vsel %vm62_vm0, %v47_v26, -inf  ;;  %v59_v60 = vld [vmem:[%s3407_s0 + $0x198] sm:$0xff]  ;;  %v57_v3 = vld [vmem:[%s3407_s0 + $0x188] sm:$0xff]  ;;  %v60_v10 = vld [vmem:[%s3407_s0 + $0x1a0] sm:$0xff] }
  0x13   :  { %v461_v57 = vcombine.high %v2268_v19, %v2268_v19  ;;  %v121_v61 = vmax.f32 %v119_v46, %v120_v48  ;;  %v126_v63 = vmax.f32 %v124_v54, %v125_v55  ;;  %v127_v0 = vsel %vm62_vm0, %v50_v34, -inf  ;;  %v55_v2 = vld [vmem:[%s3407_s0 + $0x178] sm:$0x3]  ;;  %v58_v9 = vld [vmem:[%s3407_s0 + $0x190] sm:$0x3] }
  0x14   :  { %v129_v1 = vsel %vm62_vm0, %v45_v32, -inf  ;;  %v2342_v4 = vmax.f32 %v116_v44, %v117_v45  ;;  %v122_v5 = vsel %vm73_vm1, %v43_v24, -inf  ;;  %v130_v6 = vsel %vm62_vm0, %v48_v40, -inf  ;;  %v61_v17 = vld [vmem:[%s3407_s0 + $0x1a8] sm:$0x3] }
  0x15   :  { %v134_v8 = vsel %vm73_vm1, %v46_v33, -inf  ;;  %v2353_v11 = vmax.f32 %v126_v63, %v127_v0  ;;  %v131_v12 = vmax.f32 %v129_v1, %v130_v6  ;;  %v132_v14 = vsel %vm62_vm0, %v51_v49, -inf }
  0x16   :  { %v135_v15 = vsel %vm73_vm1, %v49_v41, -inf  ;;  %v139_v20 = vsel %vm62_vm0, %v53_v51, -inf  ;;  %v140_v21 = vsel %vm62_vm0, %v56_v59, -inf  ;;  %v142_v22 = vsel %vm62_vm0, %v59_v60, -inf }
  0x17   :  { %v136_v18 = vmax.f32 %v134_v8, %v135_v15  ;;  %v137_v24 = vsel %vm73_vm1, %v52_v50, -inf  ;;  %v141_v25 = vmax.f32 %v139_v20, %v140_v21  ;;  %v144_v26 = vsel %vm62_vm0, %v54_v58, -inf }
  0x18   :  { %v145_v28 = vsel %vm62_vm0, %v57_v3, -inf  ;;  %v2366_v30 = vmax.f32 %v131_v12, %v132_v14  ;;  %v147_v32 = vsel %vm62_vm0, %v60_v10, -inf  ;;  %v149_v33 = vsel %vm73_vm1, %v55_v2, -inf }
  0x19   :  { %v146_v31 = vmax.f32 %v144_v26, %v145_v28  ;;  %v2370_v34 = vmax.f32 %v141_v25, %v142_v22  ;;  %v150_v37 = vsel %vm73_vm1, %v58_v9, -inf  ;;  %v152_v40 = vsel %vm73_vm1, %v61_v17, -inf }
  0x1a   :  { %v177_v41 = vshrl.u32 %v176_v43, 7  ;;  %v2375_v44 = vmax.f32 %v121_v61, %v122_v5  ;;  %v2377_v45 = vmax.f32 %v136_v18, %v137_v24  ;;  %v151_v48 = vmax.f32 %v149_v33, %v150_v37 }
  0x1b   :  { %v2379_v46 = vmax.f32 %v146_v31, %v147_v32  ;;  %v532_v50 = vcombine.high %v2319_v52, %v2319_v52  ;;  %v581_v51 = vcombine.high %v2342_v4, %v2342_v4  ;;  %v652_v43 = vcombine.high %v2353_v11, %v2353_v11 }
  0x1c   :  { %v2383_v49 = vsub.s32 %v175_v42, %v177_v41  ;;  %v2391_v54 = vmax.f32 %v151_v48, %v152_v40  ;;  %v701_v55 = vcombine.high %v2366_v30, %v2366_v30  ;;  %v772_v58 = vcombine.high %v2370_v34, %v2370_v34 }
  0x1d   :  { %vm2047_vm4 = vcmask 1042434   ;;  %vm2049_vm5 = vcmask 1043459   ;;  %vm2051_vm6 = vcmask 1044484   ;;  %vm2053_vm7 = vcmask 1045509  }
  0x1e   :  { %v179_v42 = vrot.slane %v2173_v29, %v2383_v49  ;;  %v186_v59 = vrot.slane %v172_v56, %v2383_v49  ;;  %v228_v60 = vrot.slane %v2184_v35, %v2383_v49  ;;  %v235_v61 = vrot.slane %v221_v62, %v2383_v49 }
  0x1f   :  { %v2413_v63 = vrot.slane %v2205_v47, %v2383_v49  ;;  %v299_v0 = vrot.slane %v2215_v53, %v2383_v49  ;;  %v306_v29 = vrot.slane %v292_v16, %v2383_v49  ;;  %v348_v56 = vrot.slane %v2246_v7, %v2383_v49 }
  0x20   :  { %v187_v1 = vcombine.high %v179_v42, %v179_v42  ;;  %v188_v2 = vcombine.high %v186_v59, %v186_v59  ;;  %v2424_v35 = vrot.slane %v179_v42, %v2383_v49  ;;  %v2427_v62 = vrot.slane %v186_v59, %v2383_v49 }
  0x21   :  { %v236_v47 = vcombine.high %v228_v60, %v228_v60  ;;  %v237_v3 = vcombine.high %v235_v61, %v235_v61  ;;  %v2430_v5 = vrot.slane %v228_v60, %v2383_v49  ;;  %v2433_v6 = vrot.slane %v235_v61, %v2383_v49 }
  0x22   :  { %v2436_v53 = vrot.slane %v187_v1, %v2383_v49  ;;  %v2439_v16 = vrot.slane %v188_v2, %v2383_v49  ;;  %v277_v9 = vcombine.high %v2413_v63, %v2413_v63  ;;  %v307_v21 = vcombine.high %v299_v0, %v299_v0 }
  0x23   :  { %v2446_v10 = vrot.slane %v236_v47, %v2383_v49  ;;  %v2449_v12 = vrot.slane %v237_v3, %v2383_v49  ;;  %v308_v25 = vcombine.high %v306_v29, %v306_v29  ;;  %v2467_v26 = vrot.slane %v299_v0, %v2383_v49 }
  0x24   :  { %v2460_v20 = vrot.slane %v277_v9, %v2383_v49  ;;  %v2470_v28 = vrot.slane %v306_v29, %v2383_v49  ;;  %v2473_v31 = vrot.slane %v307_v21, %v2383_v49  ;;  %v355_v32 = vrot.slane %v341_v38, %v2383_v49 }
  0x25   :  { %v356_v33 = vcombine.high %v348_v56, %v348_v56  ;;  %v2480_v37 = vrot.slane %v308_v25, %v2383_v49  ;;  %v2485_v41 = vrot.slane %v348_v56, %v2383_v49  ;;  %v2489_v48 = vrot.slane %v2281_v27, %v2383_v49 }
  0x26   :  { %v357_v59 = vcombine.high %v355_v32, %v355_v32  ;;  %v2494_v7 = vrot.slane %v355_v32, %v2383_v49  ;;  %v419_v0 = vrot.slane %v2256_v13, %v2383_v49  ;;  %v426_v2 = vrot.slane %v412_v39, %v2383_v49 }
  0x27   :  { %v2497_v38 = vrot.slane %v356_v33, %v2383_v49  ;;  %v397_v61 = vcombine.high %v2489_v48, %v2489_v48  ;;  %v468_v21 = vrot.slane %v2268_v19, %v2383_v49  ;;  %v475_v13 = vrot.slane %v461_v57, %v2383_v49 }
  0x28   :  { %v2508_v29 = vrot.slane %v357_v59, %v2383_v49  ;;  %v427_v3 = vcombine.high %v419_v0, %v419_v0  ;;  %v2522_v9 = vrot.slane %v419_v0, %v2383_v49  ;;  %v428_v32 = vcombine.high %v426_v2, %v426_v2 }
  0x29   :  { %v2519_v47 = vrot.slane %v397_v61, %v2383_v49  ;;  %v2529_v33 = vrot.slane %v426_v2, %v2383_v49  ;;  %v476_v61 = vcombine.high %v468_v21, %v468_v21  ;;  %v2541_v0 = vrot.slane %v468_v21, %v2383_v49 }
  0x2a   :  { %v2536_v39 = vrot.slane %v427_v3, %v2383_v49  ;;  %v2544_v25 = vrot.slane %v428_v32, %v2383_v49  ;;  %v477_v2 = vcombine.high %v475_v13, %v475_v13  ;;  %v2547_v27 = vrot.slane %v475_v13, %v2383_v49 }
  0x2b   :  { %v2551_v19 = vrot.slane %v2294_v36, %v2383_v49  ;;  %v2556_v3 = vrot.slane %v476_v61, %v2383_v49  ;;  %v539_v32 = vrot.slane %v2319_v52, %v2383_v49  ;;  %v546_v21 = vrot.slane %v532_v50, %v2383_v49 }
  0x2c   :  { %v2563_v59 = vrot.slane %v477_v2, %v2383_v49  ;;  %v588_v57 = vrot.slane %v2342_v4, %v2383_v49  ;;  %v595_v61 = vrot.slane %v581_v51, %v2383_v49  ;;  %v708_v18 = vrot.slane %v2366_v30, %v2383_v49 }
  0x2d   :  { %v517_v36 = vcombine.high %v2551_v19, %v2551_v19  ;;  %v547_v56 = vcombine.high %v539_v32, %v539_v32  ;;  %v2578_v2 = vrot.slane %v539_v32, %v2383_v49  ;;  %v548_v52 = vcombine.high %v546_v21, %v546_v21 }
  0x2e   :  { %v2592_v50 = vrot.slane %v546_v21, %v2383_v49  ;;  %v597_v60 = vcombine.high %v595_v61, %v595_v61  ;;  %v2600_v42 = vrot.slane %v588_v57, %v2383_v49  ;;  %v2603_v40 = vrot.slane %v595_v61, %v2383_v49 }
  0x2f   :  { %v2583_v1 = vrot.slane %v517_v36, %v2383_v49  ;;  %v2595_v32 = vrot.slane %v547_v56, %v2383_v49  ;;  %v596_v36 = vcombine.high %v588_v57, %v588_v57  ;;  %v2606_v4 = vrot.slane %v548_v52, %v2383_v49 }
  0x30   :  { %v2612_v56 = vrot.slane %v2375_v44, %v2383_v49  ;;  %v659_v21 = vrot.slane %v2353_v11, %v2383_v49  ;;  %v2620_v57 = vrot.slane %v597_v60, %v2383_v49  ;;  %v716_v61 = vcombine.high %v708_v18, %v708_v18 }
  0x31   :  { %v2617_v13 = vrot.slane %v596_v36, %v2383_v49  ;;  %v666_v36 = vrot.slane %v652_v43, %v2383_v49  ;;  %v2659_v22 = vrot.slane %v708_v18, %v2383_v49  ;;  %v779_v60 = vrot.slane %v2370_v34, %v2383_v49 }
  0x32   :  { %v637_v51 = vcombine.high %v2612_v56, %v2612_v56  ;;  %v667_v24 = vcombine.high %v659_v21, %v659_v21  ;;  %v2639_v52 = vrot.slane %v659_v21, %v2383_v49  ;;  %v715_v21 = vrot.slane %v701_v55, %v2383_v49 }
  0x33   :  { %v668_v15 = vcombine.high %v666_v36, %v666_v36  ;;  %v2647_v11 = vrot.slane %v666_v36, %v2383_v49  ;;  %v2676_v55 = vrot.slane %v716_v61, %v2383_v49  ;;  %v786_v36 = vrot.slane %v772_v58, %v2383_v49 }
  0x34   :  { %v2644_v44 = vrot.slane %v637_v51, %v2383_v49  ;;  %v2650_v43 = vrot.slane %v667_v24, %v2383_v49  ;;  %v2668_v24 = vrot.slane %v2377_v45, %v2383_v49  ;;  %v717_v14 = vcombine.high %v715_v21, %v715_v21 }
  0x35   :  { %v2662_v51 = vrot.slane %v668_v15, %v2383_v49  ;;  %v2673_v30 = vrot.slane %v715_v21, %v2383_v49  ;;  %v787_v17 = vcombine.high %v779_v60, %v779_v60  ;;  %v2696_v8 = vrot.slane %v779_v60, %v2383_v49 }
  0x36   :  { %3417 = vst [vmem:[#allocation2_spill] sm:$0xff] %v2668_v24  ;;  %v757_v18 = vcombine.high %v2668_v24, %v2668_v24  ;;  %v2689_v21 = vrot.slane %v717_v14, %v2383_v49  ;;  %v788_v23 = vcombine.high %v786_v36, %v786_v36  ;;  %v2702_v34 = vrot.slane %v786_v36, %v2383_v49 }
  0x37   :  { %3418 = vst [vmem:[#allocation3_spill] sm:$0xff] %v2696_v8  ;;  %v2705_v58 = vrot.slane %v787_v17, %v2383_v49  ;;  %v828_v60 = vrot.slane %v2379_v46, %v2383_v49  ;;  %v2724_v14 = vrot.slane %v2391_v54, %v2383_v49  ;;  %v892_v61 = vcombine.low %v2424_v35, %v2436_v53 }
  0x38   :  { %v2699_v45 = vrot.slane %v757_v18, %v2383_v49  ;;  %3420 = vst [vmem:[#allocation5_spill] sm:$0xff] %v2702_v34  ;;  %v3422_v18 = vcombine.high %v2379_v46, %v2379_v46  ;;  %v2718_v36 = vrot.slane %v788_v23, %v2383_v49  ;;  %v3425_v17 = vcombine.high %v2424_v35, %v2424_v35 }
  0x39   :  { %3421 = vst [vmem:[#allocation6_spill] sm:$0xff] %v2705_v58  ;;  %3424 = vst [vmem:[#allocation8_spill] sm:$0xff] %v2724_v14  ;;  %v836_v34 = vcombine.high %v828_v60, %v828_v60  ;;  %v877_v23 = vcombine.high %v2724_v14, %v2724_v14  ;;  %v899_v54 = vrot.slane %v892_v61, %v2383_v49  ;;  %vm2086_vm8 = vcmask 62464  }
  0x3a   :  { %3419 = vst [vmem:[#allocation4_spill] sm:$0xff] %v2699_v45  ;;  %v835_v15 = vrot.slane %v3422_v18, %v2383_v49  ;;  %3423 = vst [vmem:[#allocation7_spill] sm:$0xff] %v2718_v36  ;;  %v2729_v45 = vrot.slane %v828_v60, %v2383_v49  ;;  %v906_v36 = vrot.slane %v3425_v17, %v2383_v49 }
  0x3b   :  { %v2744_v58 = vrot.slane %v836_v34, %v2383_v49  ;;  %v2754_v18 = vrot.slane %v877_v23, %v2383_v49  ;;  %v3427_v35 = vcombine.high %v2436_v53, %v2436_v53  ;;  %v929_v34 = vrot.slane %v2439_v16, %v2383_v49 }
  0x3c   :  { %v837_v8 = vcombine.high %v835_v15, %v835_v15  ;;  %v2732_v46 = vrot.slane %v835_v15, %v2383_v49  ;;  %v907_v61 = vcombine.low %v899_v54, %v906_v36  ;;  %v2097_v24 = vcombine.high %v2427_v62, %v2439_v16 }
  0x3d   :  { %3426 = vst [vmem:[#allocation9_spill] sm:$0xff] %v2754_v18  ;;  %v915_v17 = vcombine.low %v3427_v35, %v2427_v62  ;;  %v952_v36 = vrot.slane %v2430_v5, %v2383_v49  ;;  %v3429_v54 = vcombine.high %v2430_v5, %v2430_v5  ;;  %v3430_v15 = vcombine.high %v2446_v10, %v2446_v10 }
  0x3e   :  { %v2747_v60 = vrot.slane %v837_v8, %v2383_v49  ;;  %v2771_v23 = vrot.slane %v907_v61, %v2383_v49  ;;  %v945_v62 = vrot.slane %v2097_v24, %v2383_v49  ;;  %v984_v16 = vcombine.low %v2433_v6, %v2449_v12 }
  0x3f   :  { %v922_v53 = vrot.slane %v915_v17, %v2383_v49  ;;  %v961_v35 = vcombine.low %v2446_v10, %v3429_v54  ;;  %v975_v8 = vrot.slane %v3430_v15, %v2383_v49  ;;  %v3431_v61 = vcombine.high %v2433_v6, %v2433_v6 }
  0x40   :  { %3428 = vst [vmem:[#allocation10_spill] sm:$0xff] %v2771_v23  ;;  %v3432_v5 = vrot.slane %v2413_v63, %v2383_v49  ;;  %v3433_v54 = vcombine.high %v2449_v12, %v2449_v12  ;;  %v1021_v24 = vrot.slane %v2460_v20, %v2383_v49  ;;  %v1030_v15 = vcombine.low %v2467_v26, %v2473_v31 }
  0x41   :  { %v998_v17 = vrot.slane %v3431_v61, %v2383_v49  ;;  %v2795_v18 = vcombine.low %v922_v53, %v929_v34  ;;  %v968_v10 = vrot.slane %v961_v35, %v2383_v49  ;;  %v2802_v14 = vcombine.low %v945_v62, %v952_v36 }
  0x42   :  { %v1007_v23 = vcombine.low %v3433_v54, %v3432_v5  ;;  %v991_v6 = vrot.slane %v984_v16, %v2383_v49  ;;  %v3434_v12 = vcombine.high %v2467_v26, %v2467_v26  ;;  %v1037_v20 = vrot.slane %v1030_v15, %v2383_v49 }
  0x43   :  { %v937_v53 = vrot.slane %v2795_v18, %v2383_v49  ;;  %v2812_v35 = vcombine.low %v968_v10, %v975_v8  ;;  %v3435_v36 = vcombine.high %v2473_v31, %v2473_v31  ;;  %v1067_v26 = vrot.slane %v2480_v37, %v2383_v49 }
  0x44   :  { %v1014_v63 = vrot.slane %v1007_v23, %v2383_v49  ;;  %v1044_v34 = vrot.slane %v3434_v12, %v2383_v49  ;;  %v960_v23 = vrot.slane %v2802_v14, %v2383_v49  ;;  %v999_v16 = vcombine.low %v991_v6, %v998_v17 }
  0x45   :  { %v1053_v62 = vcombine.low %v3435_v36, %v2470_v28  ;;  %v983_v8 = vrot.slane %v2812_v35, %v2383_v49  ;;  %v2098_v10 = vcombine.high %v2470_v28, %v2480_v37  ;;  %v3436_v15 = vcombine.high %v2485_v41, %v2485_v41 }
  0x46   :  { %v2821_v61 = vcombine.low %v1014_v63, %v1021_v24  ;;  %v1045_v5 = vcombine.low %v1037_v20, %v1044_v34  ;;  %v2831_v31 = vrot.slane %v999_v16, %v2383_v49  ;;  %v1090_v24 = vrot.slane %v2485_v41, %v2383_v49 }
  0x47   :  { %v1060_v54 = vrot.slane %v1053_v62, %v2383_v49  ;;  %v1099_v6 = vcombine.low %v2497_v38, %v3436_v15  ;;  %v1083_v28 = vrot.slane %v2098_v10, %v2383_v49  ;;  %v3437_v37 = vcombine.high %v2497_v38, %v2497_v38 }
  0x48   :  { %v1029_v17 = vrot.slane %v2821_v61, %v2383_v49  ;;  %v2842_v63 = vrot.slane %v1045_v5, %v2383_v49  ;;  %v1122_v36 = vcombine.low %v2494_v7, %v2508_v29  ;;  %v3438_v41 = vcombine.high %v2494_v7, %v2494_v7 }
  0x49   :  { %v2844_v12 = vcombine.low %v1060_v54, %v1067_v26  ;;  %v1113_v34 = vrot.slane %v3437_v37, %v2383_v49  ;;  %v1106_v20 = vrot.slane %v1099_v6, %v2383_v49  ;;  %v3439_v16 = vrot.slane %v2489_v48, %v2383_v49 }
  0x4a   :  { %v1136_v62 = vrot.slane %v3438_v41, %v2383_v49  ;;  %v3440_v26 = vcombine.high %v2508_v29, %v2508_v29  ;;  %v2866_v54 = vcombine.low %v1083_v28, %v1090_v24  ;;  %v1159_v10 = vrot.slane %v2519_v47, %v2383_v49 }
  0x4b   :  { %v1075_v38 = vrot.slane %v2844_v12, %v2383_v49  ;;  %v1168_v15 = vcombine.low %v2522_v9, %v2536_v39  ;;  %v2872_v7 = vcombine.low %v1106_v20, %v1113_v34  ;;  %v1129_v6 = vrot.slane %v1122_v36, %v2383_v49 }
  0x4c   :  { %v1145_v5 = vcombine.low %v3440_v26, %v3439_v16  ;;  %v3441_v29 = vcombine.high %v2522_v9, %v2522_v9  ;;  %v1098_v24 = vrot.slane %v2866_v54, %v2383_v49  ;;  %v3442_v47 = vcombine.high %v2536_v39, %v2536_v39 }
  0x4d   :  { %v1175_v28 = vrot.slane %v1168_v15, %v2383_v49  ;;  %v1205_v20 = vrot.slane %v2544_v25, %v2383_v49  ;;  %v1121_v36 = vrot.slane %v2872_v7, %v2383_v49  ;;  %v1137_v41 = vcombine.low %v1129_v6, %v1136_v62 }
  0x4e   :  { %v1152_v48 = vrot.slane %v1145_v5, %v2383_v49  ;;  %v1182_v37 = vrot.slane %v3441_v29, %v2383_v49  ;;  %v1191_v34 = vcombine.low %v3442_v47, %v2529_v33  ;;  %v2099_v9 = vcombine.high %v2529_v33, %v2544_v25 }
  0x4f   :  { %v1228_v15 = vrot.slane %v2541_v0, %v2383_v49  ;;  %v3443_v39 = vcombine.high %v2541_v0, %v2541_v0  ;;  %v2903_v47 = vrot.slane %v1137_v41, %v2383_v49  ;;  %v3444_v25 = vcombine.high %v2556_v3, %v2556_v3 }
  0x50   :  { %v2891_v16 = vcombine.low %v1152_v48, %v1159_v10  ;;  %v1183_v26 = vcombine.low %v1175_v28, %v1182_v37  ;;  %v1198_v5 = vrot.slane %v1191_v34, %v2383_v49  ;;  %v1221_v10 = vrot.slane %v2099_v9, %v2383_v49 }
  0x51   :  { %v1237_v29 = vcombine.low %v2556_v3, %v3443_v39  ;;  %v1251_v33 = vrot.slane %v3444_v25, %v2383_v49  ;;  %v1260_v37 = vcombine.low %v2547_v27, %v2563_v59  ;;  %v3445_v34 = vcombine.high %v2547_v27, %v2547_v27 }
  0x52   :  { %v1167_v62 = vrot.slane %v2891_v16, %v2383_v49  ;;  %v2913_v6 = vrot.slane %v1183_v26, %v2383_v49  ;;  %v2915_v48 = vcombine.low %v1198_v5, %v1205_v20  ;;  %v2920_v28 = vcombine.low %v1221_v10, %v1228_v15 }
  0x53   :  { %v1244_v0 = vrot.slane %v1237_v29, %v2383_v49  ;;  %v1274_v41 = vrot.slane %v3445_v34, %v2383_v49  ;;  %v3446_v3 = vrot.slane %v2551_v19, %v2383_v49  ;;  %v3447_v9 = vcombine.high %v2563_v59, %v2563_v59 }
  0x54   :  { %v1297_v26 = vrot.slane %v2583_v1, %v2383_v49  ;;  %v1213_v5 = vrot.slane %v2915_v48, %v2383_v49  ;;  %v1267_v39 = vrot.slane %v1260_v37, %v2383_v49  ;;  %v1306_v27 = vcombine.low %v2578_v2, %v2595_v32 }
  0x55   :  { %v1283_v20 = vcombine.low %v3447_v9, %v3446_v3  ;;  %v2936_v15 = vcombine.low %v1244_v0, %v1251_v33  ;;  %v3448_v59 = vcombine.high %v2578_v2, %v2578_v2  ;;  %v3449_v10 = vcombine.high %v2595_v32, %v2595_v32 }
  0x56   :  { %v1275_v0 = vcombine.low %v1267_v39, %v1274_v41  ;;  %v1313_v37 = vrot.slane %v1306_v27, %v2383_v49  ;;  %v1343_v34 = vrot.slane %v2606_v4, %v2383_v49  ;;  %v2100_v2 = vcombine.high %v2592_v50, %v2606_v4 }
  0x57   :  { %v1290_v29 = vrot.slane %v1283_v20, %v2383_v49  ;;  %v1320_v1 = vrot.slane %v3448_v59, %v2383_v49  ;;  %v1329_v25 = vcombine.low %v3449_v10, %v2592_v50  ;;  %v1366_v32 = vrot.slane %v2600_v42, %v2383_v49 }
  0x58   :  { %v2965_v20 = vrot.slane %v1275_v0, %v2383_v49  ;;  %v3450_v41 = vcombine.high %v2600_v42, %v2600_v42  ;;  %v3453_v0 = vrot.slane %v2612_v56, %v2383_v49  ;;  %v1444_v56 = vcombine.low %v2639_v52, %v2650_v43 }
  0x59   :  { %v2957_v3 = vcombine.low %v1290_v29, %v1297_v26  ;;  %v1336_v9 = vrot.slane %v1329_v25, %v2383_v49  ;;  %v1321_v59 = vcombine.low %v1313_v37, %v1320_v1  ;;  %v3451_v26 = vcombine.high %v2617_v13, %v2617_v13 }
  0x5a   :  { %v1375_v39 = vcombine.low %v2617_v13, %v3450_v41  ;;  %v1359_v29 = vrot.slane %v2100_v2, %v2383_v49  ;;  %v1398_v1 = vcombine.low %v2603_v40, %v2620_v57  ;;  %v3452_v13 = vcombine.high %v2603_v40, %v2603_v40 }
  0x5b   :  { %v1389_v27 = vrot.slane %v3451_v26, %v2383_v49  ;;  %v2977_v4 = vcombine.low %v1336_v9, %v1343_v34  ;;  %v2983_v10 = vrot.slane %v1321_v59, %v2383_v49  ;;  %v3454_v37 = vcombine.high %v2620_v57, %v2620_v57 }
  0x5c   :  { %v1382_v42 = vrot.slane %v1375_v39, %v2383_v49  ;;  %v1412_v25 = vrot.slane %v3452_v13, %v2383_v49  ;;  %v2998_v2 = vcombine.low %v1359_v29, %v1366_v32  ;;  %v1405_v59 = vrot.slane %v1398_v1, %v2383_v49 }
  0x5d   :  { %v1421_v34 = vcombine.low %v3454_v37, %v3453_v0  ;;  %v1435_v41 = vrot.slane %v2644_v44, %v2383_v49  ;;  %v3455_v57 = vcombine.high %v2639_v52, %v2639_v52  ;;  %v3456_v44 = vcombine.high %v2650_v43, %v2650_v43 }
  0x5e   :  { %v3003_v39 = vcombine.low %v1382_v42, %v1389_v27  ;;  %v1413_v29 = vcombine.low %v1405_v59, %v1412_v25  ;;  %v1481_v1 = vrot.slane %v2662_v51, %v2383_v49  ;;  %v1451_v52 = vrot.slane %v1444_v56, %v2383_v49 }
  0x5f   :  { %v1428_v40 = vrot.slane %v1421_v34, %v2383_v49  ;;  %v1458_v26 = vrot.slane %v3455_v57, %v2383_v49  ;;  %v1467_v27 = vcombine.low %v3456_v44, %v2647_v11  ;;  %v2101_v0 = vcombine.high %v2647_v11, %v2662_v51 }
  0x60   :  { %v3028_v25 = vrot.slane %v1413_v29, %v2383_v49  ;;  %v1504_v43 = vrot.slane %v2659_v22, %v2383_v49  ;;  %v3457_v34 = vcombine.high %v2659_v22, %v2659_v22  ;;  %v3458_v11 = vcombine.high %v2676_v55, %v2676_v55 }
  0x61   :  { %v3022_v13 = vcombine.low %v1428_v40, %v1435_v41  ;;  %v1474_v37 = vrot.slane %v1467_v27, %v2383_v49  ;;  %v1459_v40 = vcombine.low %v1451_v52, %v1458_v26  ;;  %v1497_v56 = vrot.slane %v2101_v0, %v2383_v49 }
  0x62   :  { %v1513_v59 = vcombine.low %v2676_v55, %v3457_v34  ;;  %v1527_v51 = vrot.slane %v3458_v11, %v2383_v49  ;;  %v1536_v22 = vcombine.low %v2673_v30, %v2689_v21  ;;  %v3459_v44 = vcombine.high %v2673_v30, %v2673_v30  ;;  %v3460_v55 = vld [vmem:[#allocation2_spill] sm:$0xff]  ;;  %v3463_v34 = vld [vmem:[#allocation4_spill] sm:$0xff] }
  0x63   :  { %v3044_v57 = vcombine.low %v1474_v37, %v1481_v1  ;;  %v3054_v27 = vrot.slane %v1459_v40, %v2383_v49  ;;  %v3056_v52 = vcombine.low %v1497_v56, %v1504_v43  ;;  %v3461_v0 = vrot.slane %v3460_v55, %v2383_v49  ;;  %v3465_v43 = vld [vmem:[#allocation3_spill] sm:$0xff] }
  0x64   :  { %v1520_v29 = vrot.slane %v1513_v59, %v2383_v49  ;;  %v1550_v26 = vrot.slane %v3459_v44, %v2383_v49  ;;  %v3462_v1 = vcombine.high %v2689_v21, %v2689_v21  ;;  %v1573_v59 = vrot.slane %v3463_v34, %v2383_v49  ;;  %v3464_v44 = vld [vmem:[#allocation6_spill] sm:$0xff]  ;;  %v3469_v55 = vld [vmem:[#allocation7_spill] sm:$0xff] }
  0x65   :  { %v1543_v40 = vrot.slane %v1536_v22, %v2383_v49  ;;  %v1582_v56 = vcombine.low %v3465_v43, %v3464_v44  ;;  %v3466_v21 = vcombine.high %v3465_v43, %v3465_v43  ;;  %v1619_v42 = vrot.slane %v3469_v55, %v2383_v49 }
  0x66   :  { %v1559_v37 = vcombine.low %v3462_v1, %v3461_v0  ;;  %v3068_v30 = vcombine.low %v1520_v29, %v1527_v51  ;;  %v3467_v1 = vld [vmem:[#allocation5_spill] sm:$0xff]  ;;  %v3468_v51 = vcombine.high %v3464_v44, %v3464_v44  ;;  %v1642_v44 = vrot.slane %v2729_v45, %v2383_v49 }
  0x67   :  { %v1596_v0 = vrot.slane %v3466_v21, %v2383_v49  ;;  %v1551_v34 = vcombine.low %v1543_v40, %v1550_v26  ;;  %v1589_v11 = vrot.slane %v1582_v56, %v2383_v49  ;;  %v2102_v43 = vcombine.high %v3467_v1, %v3469_v55 }
  0x68   :  { %v1566_v41 = vrot.slane %v1559_v37, %v2383_v49  ;;  %v1605_v29 = vcombine.low %v3468_v51, %v3467_v1  ;;  %v3470_v26 = vcombine.high %v2729_v45, %v2729_v45  ;;  %v1778_v18 = vsel %vm1756_vm2, %v983_v8, -inf }
  0x69   :  { %v3097_v21 = vrot.slane %v1551_v34, %v2383_v49  ;;  %v1597_v51 = vcombine.low %v1589_v11, %v1596_v0  ;;  %v1635_v1 = vrot.slane %v2102_v43, %v2383_v49  ;;  %v1674_v11 = vcombine.low %v2732_v46, %v2747_v60  ;;  %v3473_v34 = vld [vmem:[#allocation8_spill] sm:$0xff] }
  0x6a   :  { %v3089_v37 = vcombine.low %v1566_v41, %v1573_v59  ;;  %v1612_v32 = vrot.slane %v1605_v29, %v2383_v49  ;;  %v1651_v40 = vcombine.low %v2744_v58, %v3470_v26  ;;  %v3471_v41 = vcombine.high %v2744_v58, %v2744_v58 }
  0x6b   :  { %v3115_v0 = vrot.slane %v1597_v51, %v2383_v49  ;;  %v3472_v58 = vcombine.high %v2732_v46, %v2732_v46  ;;  %v3474_v26 = vrot.slane %v3473_v34, %v2383_v49  ;;  %v1681_v51 = vrot.slane %v1674_v11, %v2383_v49 }
  0x6c   :  { %v1665_v59 = vrot.slane %v3471_v41, %v2383_v49  ;;  %v3109_v55 = vcombine.low %v1612_v32, %v1619_v42  ;;  %v1658_v45 = vrot.slane %v1651_v40, %v2383_v49  ;;  %v3475_v32 = vcombine.high %v2747_v60, %v2747_v60  ;;  %v3476_v40 = vld [vmem:[#allocation9_spill] sm:$0xff] }
  0x6d   :  { %v1688_v29 = vrot.slane %v3472_v58, %v2383_v49  ;;  %v3130_v41 = vcombine.low %v1635_v1, %v1642_v44  ;;  %v1711_v56 = vrot.slane %v3476_v40, %v2383_v49  ;;  %v3477_v58 = vld [vmem:[#allocation10_spill] sm:$0xff]  ;;  %v1764_v60 = vsel %vm1756_vm2, %v937_v53, -inf }
  0x6e   :  { %v1697_v42 = vcombine.low %v3475_v32, %v3474_v26  ;;  %v3135_v22 = vcombine.low %v1658_v45, %v1665_v59  ;;  %v1757_v34 = vsel %vm1756_vm2, %v3477_v58, -inf  ;;  %v1765_v26 = vrot.slane %v1764_v60, 4 }
  0x6f   :  { %v1689_v1 = vcombine.low %v1681_v51, %v1688_v29  ;;  %v1758_v11 = vrot.slane %v1757_v34, 4  ;;  %v1771_v32 = vsel %vm1756_vm2, %v960_v23, -inf  ;;  %v1779_v40 = vrot.slane %v1778_v18, 4 }
  0x70   :  { %v1704_v46 = vrot.slane %v1697_v42, %v2383_v49  ;;  %v1766_v42 = vmax.f32 %v1764_v60, %v1765_v26  ;;  %v1772_v51 = vrot.slane %v1771_v32, 4  ;;  %v1785_v14 = vsel %vm1756_vm2, %v2831_v31, -inf }
  0x71   :  { %v3159_v53 = vrot.slane %v1689_v1, %v2383_v49  ;;  %v1759_v29 = vmax.f32 %v1757_v34, %v1758_v11  ;;  %v1792_v35 = vsel %vm1756_vm2, %v1029_v17, -inf  ;;  %v1786_v58 = vrot.slane %v1785_v14, 4 }
  0x72   :  { %v3148_v45 = vcombine.low %v1704_v46, %v1711_v56  ;;  %v1767_v8 = vrot.slane %v1766_v42, 2  ;;  %v1773_v46 = vmax.f32 %v1771_v32, %v1772_v51  ;;  %v1780_v1 = vmax.f32 %v1778_v18, %v1779_v40 }
  0x73   :  { %v1760_v23 = vrot.slane %v1759_v29, 2  ;;  %v1793_v34 = vrot.slane %v1792_v35, 4  ;;  %v1799_v60 = vsel %vm1756_vm2, %v2842_v63, -inf  ;;  %v1806_v11 = vsel %vm1756_vm2, %v1075_v38, -inf }
  0x74   :  { %v1768_v26 = vmax.f32 %v1766_v42, %v1767_v8  ;;  %v1774_v56 = vrot.slane %v1773_v46, 2  ;;  %v1787_v61 = vmax.f32 %v1785_v14, %v1786_v58  ;;  %v1781_v59 = vrot.slane %v1780_v1, 2 }
  0x75   :  { %v1761_v31 = vmax.f32 %v1759_v29, %v1760_v23  ;;  %v1794_v17 = vmax.f32 %v1792_v35, %v1793_v34  ;;  %v1800_v44 = vrot.slane %v1799_v60, 4  ;;  %v1807_v43 = vrot.slane %v1806_v11, 4 }
  0x76   :  { %v1769_v51 = vrot.slane %v1768_v26, 1  ;;  %v1775_v18 = vmax.f32 %v1773_v46, %v1774_v56  ;;  %v1788_v40 = vrot.slane %v1787_v61, 2  ;;  %v1782_v9 = vmax.f32 %v1780_v1, %v1781_v59 }
  0x77   :  { %v1762_v32 = vrot.slane %v1761_v31, 1  ;;  %v1795_v50 = vrot.slane %v1794_v17, 2  ;;  %v1801_v63 = vmax.f32 %v1799_v60, %v1800_v44  ;;  %v1808_v33 = vmax.f32 %v1806_v11, %v1807_v43 }
  0x78   :  { %v3177_v12 = vmax.f32 %v1768_v26, %v1769_v51  ;;  %v1776_v38 = vrot.slane %v1775_v18, 1  ;;  %v1789_v29 = vmax.f32 %v1787_v61, %v1788_v40  ;;  %v1783_v42 = vrot.slane %v1782_v9, 1 }
  0x79   :  { %v3175_v19 = vmax.f32 %v1761_v31, %v1762_v32  ;;  %v1796_v14 = vmax.f32 %v1794_v17, %v1795_v50  ;;  %v1802_v23 = vrot.slane %v1801_v63, 2  ;;  %v1809_v35 = vrot.slane %v1808_v33, 2 }
  0x7a   :  { %v3179_v8 = vmax.f32 %v1775_v18, %v1776_v38  ;;  %v1790_v58 = vrot.slane %v1789_v29, 1  ;;  %v1813_v59 = vsel %vm1756_vm2, %v1098_v24, -inf  ;;  %v1820_v43 = vsel %vm1756_vm2, %v1121_v36, -inf }
  0x7b   :  { %v3189_v44 = vmax.f32 %v1782_v9, %v1783_v42  ;;  %v1797_v56 = vrot.slane %v1796_v14, 1  ;;  %v1803_v46 = vmax.f32 %v1801_v63, %v1802_v23  ;;  %v1810_v50 = vmax.f32 %v1808_v33, %v1809_v35 }
  0x7c   :  { %v3191_v1 = vmax.f32 %v1789_v29, %v1790_v58  ;;  %v1814_v34 = vrot.slane %v1813_v59, 4  ;;  %v1821_v60 = vrot.slane %v1820_v43, 4  ;;  %v1827_v11 = vsel %vm1756_vm2, %v2903_v47, -inf }
  0x7d   :  { %v3195_v54 = vmax.f32 %v1796_v14, %v1797_v56  ;;  %v1804_v24 = vrot.slane %v1803_v46, 1  ;;  %v1811_v31 = vrot.slane %v1810_v50, 1  ;;  %v1828_v26 = vrot.slane %v1827_v11, 4 }
  0x7e   :  { %v1815_v7 = vmax.f32 %v1813_v59, %v1814_v34  ;;  %v1822_v61 = vmax.f32 %v1820_v43, %v1821_v60  ;;  %v1834_v36 = vsel %vm1756_vm2, %v1167_v62, -inf  ;;  %v1841_v33 = vsel %vm1756_vm2, %v2913_v6, -inf }
  0x7f   :  { %v3203_v9 = vmax.f32 %v1803_v46, %v1804_v24  ;;  %v3205_v17 = vmax.f32 %v1810_v50, %v1811_v31  ;;  %v1829_v47 = vmax.f32 %v1827_v11, %v1828_v26  ;;  %v1835_v32 = vrot.slane %v1834_v36, 4 }
  0x80   :  { %v1816_v51 = vrot.slane %v1815_v7, 2  ;;  %v1823_v18 = vrot.slane %v1822_v61, 2  ;;  %v1842_v40 = vrot.slane %v1841_v33, 4  ;;  %v1848_v63 = vsel %vm1756_vm2, %v1213_v5, -inf }
  0x81   :  { %v1830_v16 = vrot.slane %v1829_v47, 2  ;;  %v1836_v38 = vmax.f32 %v1834_v36, %v1835_v32  ;;  %v1849_v62 = vrot.slane %v1848_v63, 4  ;;  %v3478_v6 = vrot.slane %v2920_v28, %v2383_v49 }
  0x82   :  { %v1817_v42 = vmax.f32 %v1815_v7, %v1816_v51  ;;  %v1824_v14 = vmax.f32 %v1822_v61, %v1823_v18  ;;  %v1843_v23 = vmax.f32 %v1841_v33, %v1842_v40  ;;  %v3479_v48 = vrot.slane %v2936_v15, %v2383_v49 }
  0x83   :  { %v1855_v29 = vsel %vm1756_vm2, %v3478_v6, -inf  ;;  %v1831_v58 = vmax.f32 %v1829_v47, %v1830_v16  ;;  %v1837_v59 = vrot.slane %v1836_v38, 2  ;;  %v1850_v43 = vmax.f32 %v1848_v63, %v1849_v62 }
  0x84   :  { %v1856_v35 = vrot.slane %v1855_v29, 4  ;;  %v1862_v5 = vsel %vm1756_vm2, %v3479_v48, -inf  ;;  %v1818_v56 = vrot.slane %v1817_v42, 1  ;;  %v1825_v46 = vrot.slane %v1824_v14, 1 }
  0x85   :  { %v1844_v50 = vrot.slane %v1843_v23, 2  ;;  %v1832_v60 = vrot.slane %v1831_v58, 1  ;;  %v1838_v28 = vmax.f32 %v1836_v38, %v1837_v59  ;;  %v1851_v11 = vrot.slane %v1850_v43, 2 }
  0x86   :  { %v1857_v34 = vmax.f32 %v1855_v29, %v1856_v35  ;;  %v1863_v24 = vrot.slane %v1862_v5, 4  ;;  %v3219_v31 = vmax.f32 %v1817_v42, %v1818_v56  ;;  %v3221_v26 = vmax.f32 %v1824_v14, %v1825_v46 }
  0x87   :  { %v1845_v7 = vmax.f32 %v1843_v23, %v1844_v50  ;;  %v3223_v36 = vmax.f32 %v1831_v58, %v1832_v60  ;;  %v1839_v33 = vrot.slane %v1838_v28, 1  ;;  %v1852_v15 = vmax.f32 %v1850_v43, %v1851_v11 }
  0x88   :  { %v1858_v61 = vrot.slane %v1857_v34, 2  ;;  %v1864_v47 = vmax.f32 %v1862_v5, %v1863_v24  ;;  %v1869_v18 = vsel %vm1756_vm2, %v2965_v20, -inf  ;;  %v3480_v40 = vrot.slane %v2957_v3, %v2383_v49 }
  0x89   :  { %v1846_v32 = vrot.slane %v1845_v7, 1  ;;  %v3231_v16 = vmax.f32 %v1838_v28, %v1839_v33  ;;  %v1853_v38 = vrot.slane %v1852_v15, 1  ;;  %v1870_v6 = vrot.slane %v1869_v18, 4 }
  0x8a   :  { %v1859_v51 = vmax.f32 %v1857_v34, %v1858_v61  ;;  %v1876_v63 = vsel %vm1756_vm2, %v3480_v40, -inf  ;;  %v1865_v62 = vrot.slane %v1864_v47, 2  ;;  %v1883_v23 = vsel %vm1756_vm2, %v2983_v10, -inf }
  0x8b   :  { %v3233_v29 = vmax.f32 %v1845_v7, %v1846_v32  ;;  %v1877_v14 = vrot.slane %v1876_v63, 4  ;;  %v3237_v35 = vmax.f32 %v1852_v15, %v1853_v38  ;;  %v1871_v58 = vmax.f32 %v1869_v18, %v1870_v6 }
  0x8c   :  { %v1860_v42 = vrot.slane %v1859_v51, 1  ;;  %v1866_v20 = vmax.f32 %v1864_v47, %v1865_v62  ;;  %v1884_v59 = vrot.slane %v1883_v23, 4  ;;  %v3481_v48 = vrot.slane %v2977_v4, %v2383_v49 }
  0x8d   :  { %v1878_v43 = vmax.f32 %v1876_v63, %v1877_v14  ;;  %v3482_v56 = vrot.slane %v2998_v2, %v2383_v49  ;;  %v1872_v10 = vrot.slane %v1871_v58, 2  ;;  %v3483_v24 = vrot.slane %v3003_v39, %v2383_v49 }
  0x8e   :  { %v3239_v3 = vmax.f32 %v1859_v51, %v1860_v42  ;;  %v1890_v5 = vsel %vm1756_vm2, %v3481_v48, -inf  ;;  %v1867_v50 = vrot.slane %v1866_v20, 1  ;;  %v1885_v34 = vmax.f32 %v1883_v23, %v1884_v59 }
  0x8f   :  { %v1897_v46 = vsel %vm1756_vm2, %v3482_v56, -inf  ;;  %v1891_v60 = vrot.slane %v1890_v5, 4  ;;  %v1879_v28 = vrot.slane %v1878_v43, 2  ;;  %v1904_v7 = vsel %vm1756_vm2, %v3483_v24, -inf }
  0x90   :  { %v1898_v11 = vrot.slane %v1897_v46, 4  ;;  %v1911_v4 = vsel %vm1756_vm2, %v3028_v25, -inf  ;;  %v3255_v61 = vmax.f32 %v1866_v20, %v1867_v50  ;;  %v1873_v33 = vmax.f32 %v1871_v58, %v1872_v10 }
  0x91   :  { %v1886_v2 = vrot.slane %v1885_v34, 2  ;;  %v1892_v15 = vmax.f32 %v1890_v5, %v1891_v60  ;;  %v1880_v47 = vmax.f32 %v1878_v43, %v1879_v28  ;;  %v1905_v51 = vrot.slane %v1904_v7, 4 }
  0x92   :  { %v1899_v32 = vmax.f32 %v1897_v46, %v1898_v11  ;;  %v1912_v18 = vrot.slane %v1911_v4, 4  ;;  %v1874_v40 = vrot.slane %v1873_v33, 1  ;;  %v3484_v39 = vrot.slane %v3022_v13, %v2383_v49 }
  0x93   :  { %v1887_v63 = vmax.f32 %v1885_v34, %v1886_v2  ;;  %v1893_v38 = vrot.slane %v1892_v15, 2  ;;  %v1881_v6 = vrot.slane %v1880_v47, 1  ;;  %v1906_v25 = vmax.f32 %v1904_v7, %v1905_v51 }
  0x94   :  { %v1918_v62 = vsel %vm1756_vm2, %v3484_v39, -inf  ;;  %v1900_v42 = vrot.slane %v1899_v32, 2  ;;  %v1913_v14 = vmax.f32 %v1911_v4, %v1912_v18  ;;  %v3261_v23 = vmax.f32 %v1873_v33, %v1874_v40 }
  0x95   :  { %v1888_v20 = vrot.slane %v1887_v63, 1  ;;  %v1894_v58 = vmax.f32 %v1892_v15, %v1893_v38  ;;  %v1919_v59 = vrot.slane %v1918_v62, 4  ;;  %v3263_v43 = vmax.f32 %v1880_v47, %v1881_v6 }
  0x96   :  { %v1901_v48 = vmax.f32 %v1899_v32, %v1900_v42  ;;  %v1907_v5 = vrot.slane %v1906_v25, 2  ;;  %v1914_v56 = vrot.slane %v1913_v14, 2  ;;  %v1925_v10 = vsel %vm1756_vm2, %v3054_v27, -inf }
  0x97   :  { %v3265_v46 = vmax.f32 %v1887_v63, %v1888_v20  ;;  %v1895_v50 = vrot.slane %v1894_v58, 1  ;;  %v1920_v13 = vmax.f32 %v1918_v62, %v1919_v59  ;;  %v1926_v11 = vrot.slane %v1925_v10, 4 }
  0x98   :  { %v1902_v34 = vrot.slane %v1901_v48, 1  ;;  %v1908_v60 = vmax.f32 %v1906_v25, %v1907_v5  ;;  %v1915_v28 = vmax.f32 %v1913_v14, %v1914_v56  ;;  %v3485_v4 = vrot.slane %v3044_v57, %v2383_v49 }
  0x99   :  { %v3269_v24 = vmax.f32 %v1894_v58, %v1895_v50  ;;  %v1921_v7 = vrot.slane %v1920_v13, 2  ;;  %v3486_v2 = vrot.slane %v3056_v52, %v2383_v49  ;;  %v1927_v51 = vmax.f32 %v1925_v10, %v1926_v11 }
  0x9a   :  { %v1932_v33 = vsel %vm1756_vm2, %v3485_v4, -inf  ;;  %v3279_v47 = vmax.f32 %v1901_v48, %v1902_v34  ;;  %v1909_v27 = vrot.slane %v1908_v60, 1  ;;  %v1916_v32 = vrot.slane %v1915_v28, 1 }
  0x9b   :  { %v1939_v15 = vsel %vm1756_vm2, %v3486_v2, -inf  ;;  %v1922_v18 = vmax.f32 %v1920_v13, %v1921_v7  ;;  %v1933_v40 = vrot.slane %v1932_v33, 4  ;;  %v3487_v38 = vrot.slane %v3068_v30, %v2383_v49 }
  0x9c   :  { %v1940_v63 = vrot.slane %v1939_v15, 4  ;;  %v3285_v39 = vmax.f32 %v1908_v60, %v1909_v27  ;;  %v3287_v62 = vmax.f32 %v1915_v28, %v1916_v32  ;;  %v1928_v52 = vrot.slane %v1927_v51, 2 }
  0x9d   :  { %v1946_v57 = vsel %vm1756_vm2, %v3487_v38, -inf  ;;  %v1923_v42 = vrot.slane %v1922_v18, 1  ;;  %v1934_v25 = vmax.f32 %v1932_v33, %v1933_v40  ;;  %v1953_v20 = vsel %vm1756_vm2, %v3097_v21, -inf }
  0x9e   :  { %v1947_v6 = vrot.slane %v1946_v57, 4  ;;  %v1941_v14 = vmax.f32 %v1939_v15, %v1940_v63  ;;  %v1929_v58 = vmax.f32 %v1927_v51, %v1928_v52  ;;  %v1954_v48 = vrot.slane %v1953_v20, 4 }
  0x9f   :  { %v3488_v30 = vrot.slane %v3089_v37, %v2383_v49  ;;  %v3295_v56 = vmax.f32 %v1922_v18, %v1923_v42  ;;  %v1935_v50 = vrot.slane %v1934_v25, 2  ;;  %v1967_v11 = vsel %vm1756_vm2, %v3115_v0, -inf }
  0xa0   :  { %v1948_v59 = vmax.f32 %v1946_v57, %v1947_v6  ;;  %v1942_v13 = vrot.slane %v1941_v14, 2  ;;  %v1930_v34 = vrot.slane %v1929_v58, 1  ;;  %v1955_v28 = vmax.f32 %v1953_v20, %v1954_v48 }
  0xa1   :  { %v1960_v5 = vsel %vm1756_vm2, %v3488_v30, -inf  ;;  %v1936_v21 = vmax.f32 %v1934_v25, %v1935_v50  ;;  %v1968_v33 = vrot.slane %v1967_v11, 4  ;;  %v3489_v27 = vrot.slane %v3109_v55, %v2383_v49 }
  0xa2   :  { %v1961_v10 = vrot.slane %v1960_v5, 4  ;;  %v1949_v60 = vrot.slane %v1948_v59, 2  ;;  %v1943_v7 = vmax.f32 %v1941_v14, %v1942_v13  ;;  %v3299_v2 = vmax.f32 %v1929_v58, %v1930_v34 }
  0xa3   :  { %v1956_v15 = vrot.slane %v1955_v28, 2  ;;  %v1974_v32 = vsel %vm1756_vm2, %v3489_v27, -inf  ;;  %v1937_v51 = vrot.slane %v1936_v21, 1  ;;  %v1969_v63 = vmax.f32 %v1967_v11, %v1968_v33 }
  0xa4   :  { %v1962_v4 = vmax.f32 %v1960_v5, %v1961_v10  ;;  %v1950_v37 = vmax.f32 %v1948_v59, %v1949_v60  ;;  %v1944_v18 = vrot.slane %v1943_v7, 1  ;;  %v1975_v0 = vrot.slane %v1974_v32, 4 }
  0xa5   :  { %v1957_v57 = vmax.f32 %v1955_v28, %v1956_v15  ;;  %v3490_v52 = vrot.slane %v3130_v41, %v2383_v49  ;;  %v3309_v42 = vmax.f32 %v1936_v21, %v1937_v51  ;;  %v1970_v55 = vrot.slane %v1969_v63, 2 }
  0xa6   :  { %v1963_v40 = vrot.slane %v1962_v4, 2  ;;  %v1951_v38 = vrot.slane %v1950_v37, 1  ;;  %v3311_v25 = vmax.f32 %v1943_v7, %v1944_v18  ;;  %v1976_v59 = vmax.f32 %v1974_v32, %v1975_v0 }
  0xa7   :  { %v1981_v6 = vsel %vm1756_vm2, %v3490_v52, -inf  ;;  %v1958_v58 = vrot.slane %v1957_v57, 1  ;;  %v1971_v5 = vmax.f32 %v1969_v63, %v1970_v55  ;;  %v3491_v50 = vrot.slane %v3135_v22, %v2383_v49 }
  0xa8   :  { %v1964_v14 = vmax.f32 %v1962_v4, %v1963_v40  ;;  %v3313_v20 = vmax.f32 %v1950_v37, %v1951_v38  ;;  %v1982_v48 = vrot.slane %v1981_v6, 4  ;;  %v1995_v13 = vsel %vm1756_vm2, %v3159_v53, -inf }
  0xa9   :  { %v1988_v41 = vsel %vm1756_vm2, %v3491_v50, -inf  ;;  %v3321_v10 = vmax.f32 %v1957_v57, %v1958_v58  ;;  %v1977_v34 = vrot.slane %v1976_v59, 2  ;;  %v1972_v21 = vrot.slane %v1971_v5, 1 }
  0xaa   :  { %v1965_v30 = vrot.slane %v1964_v14, 1  ;;  %v1983_v60 = vmax.f32 %v1981_v6, %v1982_v48  ;;  %v1989_v28 = vrot.slane %v1988_v41, 4  ;;  %v1996_v7 = vrot.slane %v1995_v13, 4 }
  0xab   :  { %v3492_v4 = vrot.slane %v3148_v45, %v2383_v49  ;;  %v1978_v22 = vmax.f32 %v1976_v59, %v1977_v34  ;;  %v1973_v32 = vmax.f32 %v1971_v5, %v1972_v21  ;;  %v2046_v57 = vsel %vm2045_vm3, %v3177_v12, %v3175_v19 }
  0xac   :  { %v3323_v11 = vmax.f32 %v1964_v14, %v1965_v30  ;;  %v1984_v37 = vrot.slane %v1983_v60, 2  ;;  %v1990_v15 = vmax.f32 %v1988_v41, %v1989_v28  ;;  %v1997_v53 = vmax.f32 %v1995_v13, %v1996_v7 }
  0xad   :  { %v2002_v33 = vsel %vm1756_vm2, %v3492_v4, -inf  ;;  %v1979_v51 = vrot.slane %v1978_v22, 1  ;;  %v2048_v14 = vsel %vm2047_vm4, %v3179_v8, %v2046_v57  ;;  %v2055_v55 = vsel %vm2045_vm3, %v3205_v17, %v3203_v9 }
  0xae   :  { %v2003_v27 = vrot.slane %v2002_v33, 4  ;;  %v1985_v18 = vmax.f32 %v1983_v60, %v1984_v37  ;;  %v1991_v40 = vrot.slane %v1990_v15, 2  ;;  %v1998_v38 = vrot.slane %v1997_v53, 2 }
  0xaf   :  { %v1980_v49 = vmax.f32 %v1978_v22, %v1979_v51  ;;  %v2050_v19 = vsel %vm2049_vm5, %v3189_v44, %v2048_v14  ;;  %v2056_v5 = vsel %vm2047_vm4, %v3219_v31, %v2055_v55  ;;  %v2060_v8 = vsel %vm2045_vm3, %v3237_v35, %v3233_v29 }
  0xb0   :  { %v2004_v63 = vmax.f32 %v2002_v33, %v2003_v27  ;;  %v1986_v45 = vrot.slane %v1985_v18, 1  ;;  %v1992_v0 = vmax.f32 %v1990_v15, %v1991_v40  ;;  %v1999_v6 = vmax.f32 %v1997_v53, %v1998_v38 }
  0xb1   :  { %v2052_v30 = vsel %vm2051_vm6, %v3191_v1, %v2050_v19  ;;  %v2057_v17 = vsel %vm2049_vm5, %v3221_v26, %v2056_v5  ;;  %v2061_v1 = vsel %vm2047_vm4, %v3239_v3, %v2060_v8  ;;  %v2065_v31 = vsel %vm2045_vm3, %v3269_v24, %v3265_v46 }
  0xb2   :  { %v2005_v52 = vrot.slane %v2004_v63, 2  ;;  %v1987_v58 = vmax.f32 %v1985_v18, %v1986_v45  ;;  %v1993_v59 = vrot.slane %v1992_v0, 1  ;;  %v2000_v12 = vrot.slane %v1999_v6, 1 }
  0xb3   :  { %v2054_v9 = vsel %vm2053_vm7, %v3195_v54, %v2052_v30  ;;  %v2058_v13 = vsel %vm2051_vm6, %v3223_v36, %v2057_v17  ;;  %v2062_v54 = vsel %vm2049_vm5, %v3255_v61, %v2061_v1  ;;  %v2066_v26 = vsel %vm2047_vm4, %v3279_v47, %v2065_v31 }
  0xb4   :  { %v2006_v48 = vmax.f32 %v2004_v63, %v2005_v52  ;;  %v1994_v50 = vmax.f32 %v1992_v0, %v1993_v59  ;;  %v2001_v44 = vmax.f32 %v1999_v6, %v2000_v12  ;;  %v2059_v35 = vsel %vm2053_vm7, %v3231_v16, %v2058_v13  ;;  %2087 = vst.msk [vmem:[%s3408_s1] sm:$0x3f] %vm2086_vm8, %v2054_v9 }
  0xb5   :  { %v2063_v36 = vsel %vm2051_vm6, %v3261_v23, %v2062_v54  ;;  %v2067_v3 = vsel %vm2049_vm5, %v3285_v39, %v2066_v26  ;;  %v2070_v46 = vsel %vm2045_vm3, %v3309_v42, %v3299_v2  ;;  %v2075_v24 = vsel %vm2045_vm3, %v1980_v49, %v1973_v32  ;;  %2088 = vst.msk [vmem:[%s3408_s1 + $0x8] sm:$0x3f] %vm2086_vm8, %v2059_v35 }
  0xb6   :  { %v2007_v41 = vrot.slane %v2006_v48, 1  ;;  %v2064_v16 = vsel %vm2053_vm7, %v3263_v43, %v2063_v36  ;;  %v2068_v61 = vsel %vm2051_vm6, %v3287_v62, %v2067_v3  ;;  %v2071_v47 = vsel %vm2047_vm4, %v3311_v25, %v2070_v46 }
  0xb7   :  { %v2076_v23 = vsel %vm2047_vm4, %v1987_v58, %v2075_v24  ;;  %v2069_v39 = vsel %vm2053_vm7, %v3295_v56, %v2068_v61  ;;  %v2072_v34 = vsel %vm2049_vm5, %v3313_v20, %v2071_v47  ;;  %2089 = vst.msk [vmem:[%s3408_s1 + $0x10] sm:$0x3f] %vm2086_vm8, %v2064_v16 }
  0xb8   :  { %v2008_v29 = vmax.f32 %v2006_v48, %v2007_v41  ;;  %v2077_v2 = vsel %vm2049_vm5, %v1994_v50, %v2076_v23  ;;  %v2073_v43 = vsel %vm2051_vm6, %v3321_v10, %v2072_v34  ;;  %2090 = vst.msk [vmem:[%s3408_s1 + $0x18] sm:$0x3f] %vm2086_vm8, %v2069_v39 }
  0xb9   :  { %v2078_v42 = vsel %vm2051_vm6, %v2001_v44, %v2077_v2  ;;  %v2074_v62 = vsel %vm2053_vm7, %v3323_v11, %v2073_v43 }
  0xba   :  { %v2079_v56 = vsel %vm2053_vm7, %v2008_v29, %v2078_v42  ;;  %2091 = vst.msk [vmem:[%s3408_s1 + $0x20] sm:$0x3f] %vm2086_vm8, %v2074_v62 }
  0xbb   :  { %2092 = vst.msk [vmem:[%s3408_s1 + $0x28] sm:$0x3f] %vm2086_vm8, %v2079_v56 }

</bundles_post_ra>
